<compile_context>
chip_gen: v7x
topology: tpu7x:2x2x1
jax: 0.10.0
libtpu: 0.0.40
codegen_flags: <defaults>
</compile_context>

<pallas_src>
import functools
import math

import jax
import jax.numpy as jnp
import numpy as np
from jax.experimental import pallas as pl
from jax.experimental.pallas import tpu as pltpu

EMBED_DIM = 64
N_HEADS = 8
HEAD_DIM = EMBED_DIM // N_HEADS  # single_head_dim


def _mha_kernel(q_in_ref, kv_in_ref, wq_ref, wkv_ref, bkv_ref, mask_ref, o_ref,
                *, H, E, compute_dtype):
    """One batch per grid step.  All matmuls accumulate in f32 on the MXU."""
    f32 = jnp.float32
    cd = compute_dtype

    # ---- projections: two lane-dense MXU matmuls (1/sqrt(d) folded into wq) --
    q = jnp.dot(q_in_ref[...].astype(cd), wq_ref[...],
                preferred_element_type=f32)                       # (Sq, E)
    kv = (jnp.dot(kv_in_ref[...].astype(cd), wkv_ref[...],
                  preferred_element_type=f32)
          + bkv_ref[...])                                         # (S, 2E)
    k = kv[:, :E]                                                 # (S, E)
    v = kv[:, E:]                                                 # (S, E)

    # ---- head-block-diagonal expansion --------------------------------------
    # Row h*S + j of k_exp holds head h of K row j in lanes [h*d, (h+1)*d) and
    # zeros elsewhere (sublane tile of K, then a precomputed lane mask).
    head_mask = mask_ref[...]                                     # (H*S, E), 0/1
    k_exp = jnp.concatenate([k.astype(cd)] * H, axis=0) * head_mask  # (H*S, E)
    v_exp = jnp.concatenate([v.astype(cd)] * H, axis=0) * head_mask  # (H*S, E)

    # ---- scores for all heads of this batch in one MXU matmul (no k.T) ------
    # s[i, h*S + j] = q_h[i] . k_h[j] / sqrt(d)
    s = jax.lax.dot_general(q.astype(cd), k_exp, (((1,), (1,)), ((), ())),
                            preferred_element_type=f32)           # (Sq, H*S)

    # ---- softmax over each length-S lane segment (one segment per head) -----
    # Row-global max is a valid shift (cancels exactly); per-head denominators
    # come from a matmul against the same head mask.  Denominator is clamped so
    # a fully-underflowed head cannot produce 0 * inf = NaN.
    m = jnp.max(s, axis=-1, keepdims=True)
    p = jnp.exp(s - m)                                            # (Sq, H*S) f32
    p_cd = p.astype(cd)
    o_un = jnp.dot(p_cd, v_exp, preferred_element_type=f32)       # (Sq, E)
    denom = jnp.dot(p_cd, head_mask, preferred_element_type=f32)  # (Sq, E)
    o_ref[...] = o_un / jnp.maximum(denom, 1e-30)


def multi_head_attention(key_in, query_in, value_in, Wq, Wk, Wv, bv,
                         *, compute_dtype=jnp.bfloat16):
    B, S, E = key_in.shape
    Sq = query_in.shape[1]
    H = N_HEADS
    d = E // H
    scale = 1.0 / math.sqrt(d)
    cd = compute_dtype

    # --- wrapper-side parameter / layout plumbing (XLA, once per call) ---
    wq_bd = (jnp.kron(jnp.eye(H, dtype=jnp.float32), Wq.T.astype(jnp.float32))
             * scale).astype(cd)                                  # (E, E)
    wk_bd = jnp.kron(jnp.eye(H, dtype=jnp.float32), Wk.T.astype(jnp.float32))
    w_kv = jnp.zeros((2 * E, 2 * E), jnp.float32)                 # fused K/V weight
    w_kv = w_kv.at[:E, :E].set(wk_bd)
    w_kv = w_kv.at[E:, E:].set(Wv.T.astype(jnp.float32))
    w_kv = w_kv.astype(cd)
    b_kv = jnp.concatenate([jnp.zeros((E,), jnp.float32),
                            bv.astype(jnp.float32)]).reshape(1, 2 * E)

    # Shape-only constant, hoisted out of the per-step body (built on host).
    hm = np.zeros((H * S, E), np.float32)
    for h in range(H):
        hm[h * S:(h + 1) * S, h * d:(h + 1) * d] = 1.0
    head_mask = jnp.asarray(hm).astype(cd)

    q_flat = query_in.reshape(B * Sq, E)
    kv_flat = jnp.concatenate([key_in, value_in], axis=-1).reshape(B * S, 2 * E)

    kernel = functools.partial(_mha_kernel, H=H, E=E, compute_dtype=cd)
    out = pl.pallas_call(
        kernel,
        out_shape=jax.ShapeDtypeStruct((B * Sq, E), jnp.float32),
        grid=(B,),
        in_specs=[
            pl.BlockSpec((Sq, E), lambda b: (b, 0)),          # query rows, batch b
            pl.BlockSpec((S, 2 * E), lambda b: (b, 0)),       # [key | value] rows
            pl.BlockSpec((E, E), lambda b: (0, 0)),           # Wq block-diag * scale
            pl.BlockSpec((2 * E, 2 * E), lambda b: (0, 0)),   # fused K/V weight
            pl.BlockSpec((1, 2 * E), lambda b: (0, 0)),       # fused bias (f32)
            pl.BlockSpec((H * S, E), lambda b: (0, 0)),       # head lane mask
        ],
        out_specs=pl.BlockSpec((Sq, E), lambda b: (b, 0)),
        compiler_params=pltpu.CompilerParams(
            dimension_semantics=("parallel",),
            vmem_limit_bytes=32 * 1024 * 1024),
    )(q_flat, kv_flat, wq_bd, w_kv, b_kv, head_mask)
    return out.reshape(B, Sq, E)


def ref_forward(key_in, query_in, value_in, Wq, Wk, Wv, bv):
    """Pure-JAX reference of the (completed) forward pass, all f32."""
    B, S, E = key_in.shape
    Sq = query_in.shape[1]
    H, d = N_HEADS, HEAD_DIM
    kh = key_in.reshape(B, S, H, d)
    qh = query_in.reshape(B, Sq, H, d)
    k = jnp.einsum('bshd,od->bsho', kh, Wk)                 # key_matrix (no bias)
    q = jnp.einsum('bqhd,od->bqho', qh, Wq)                 # query_matrix (no bias)
    v = (value_in @ Wv.T + bv).reshape(B, S, H, d)          # value_matrix (bias)
    q = q.transpose(0, 2, 1, 3)
    k = k.transpose(0, 2, 1, 3)
    v = v.transpose(0, 2, 1, 3)
    s = jnp.einsum('bhqd,bhkd->bhqk', q, k) / math.sqrt(d)
    p = jax.nn.softmax(s, axis=-1)
    o = jnp.einsum('bhqk,bhkd->bhqd', p, v)
    return o.transpose(0, 2, 1, 3).reshape(B, Sq, E)


if __name__ == "__main__":
    B, S, Sq, E, d = 2, 8, 8, EMBED_DIM, HEAD_DIM

    root = jax.random.PRNGKey(0)
    k1, k2, k3, k4, k5, k6, k7 = jax.random.split(root, 7)

    key_in = jax.random.normal(k1, (B, S, E), dtype=jnp.float32)
    query_in = jax.random.normal(k2, (B, Sq, E), dtype=jnp.float32)
    value_in = jax.random.normal(k3, (B, S, E), dtype=jnp.float32)

    # Deterministic parameter init (PyTorch Linear weight convention: (out, in)).
    Wq = jax.random.normal(k4, (d, d), dtype=jnp.float32) * (1.0 / math.sqrt(d))
    Wk = jax.random.normal(k5, (d, d), dtype=jnp.float32) * (1.0 / math.sqrt(d))
    Wv = jax.random.normal(k6, (E, E), dtype=jnp.float32) * (1.0 / math.sqrt(E))
    bv = jax.random.normal(k7, (E,), dtype=jnp.float32) * 0.1

    ref = ref_forward(key_in, query_in, value_in, Wq, Wk, Wv, bv)

    # Production configuration: bf16 MXU operands, f32 accumulation.
    # Loose tolerance covers bf16 operand quantisation vs. the f32 reference.
    out_bf16 = multi_head_attention(key_in, query_in, value_in, Wq, Wk, Wv, bv,
                                    compute_dtype=jnp.bfloat16)
    out_bf16 = jax.block_until_ready(out_bf16)
    np.testing.assert_allclose(np.asarray(out_bf16), np.asarray(ref),
                               rtol=1e-1, atol=1e-1)

    # Reference-matching configuration: f32 everywhere (exact divide in the
    # softmax normalisation -> tight agreement with the f32 reference).
    out_f32 = multi_head_attention(key_in, query_in, value_in, Wq, Wk, Wv, bv,
                                   compute_dtype=jnp.float32)
    out_f32 = jax.block_until_ready(out_f32)
    np.testing.assert_allclose(np.asarray(out_f32), np.asarray(ref),
                               rtol=2e-3, atol=2e-3)

    print("KERNEL_OK")
</pallas_src>

<mosaic_0001>
module attributes {stable_mosaic.version = 11 : i64} {
  func.func @_mha_kernel(%arg0: i32, %arg1: memref<8x64xf32, #tpu.memory_space<vmem>>, %arg2: memref<8x128xf32, #tpu.memory_space<vmem>>, %arg3: memref<64x64xbf16, #tpu.memory_space<vmem>>, %arg4: memref<128x128xbf16, #tpu.memory_space<vmem>>, %arg5: memref<1x128xf32, #tpu.memory_space<vmem>>, %arg6: memref<64x64xbf16, #tpu.memory_space<vmem>>, %arg7: memref<8x64xf32, #tpu.memory_space<vmem>>) attributes {dimension_semantics = [#tpu.dimension_semantics<parallel>], iteration_bounds = array<i64: 2>, scalar_prefetch = 0 : i64, scratch_operands = 0 : i64, tpu.core_type = #tpu.core_type<tc>, window_params = [{transform_indices = @transform_0, window_bounds = array<i64: 8, 64>}, {transform_indices = @transform_1, window_bounds = array<i64: 8, 128>}, {pipeline_mode = #tpu.pipeline_mode<synchronous>, transform_indices = @transform_2, window_bounds = array<i64: 64, 64>}, {pipeline_mode = #tpu.pipeline_mode<synchronous>, transform_indices = @transform_3, window_bounds = array<i64: 128, 128>}, {pipeline_mode = #tpu.pipeline_mode<synchronous>, transform_indices = @transform_4, window_bounds = array<i64: 1, 128>}, {pipeline_mode = #tpu.pipeline_mode<synchronous>, transform_indices = @transform_5, window_bounds = array<i64: 64, 64>}, {transform_indices = @transform_6, window_bounds = array<i64: 8, 64>}]} {
    %c0 = arith.constant 0 : index
    %c0_0 = arith.constant 0 : index
    %0 = vector.load %arg1[%c0, %c0_0] : memref<8x64xf32, #tpu.memory_space<vmem>>, vector<8x64xf32>
    %1 = arith.truncf %0 : vector<8x64xf32> to vector<8x64xbf16>
    %c0_1 = arith.constant 0 : index
    %c0_2 = arith.constant 0 : index
    %2 = vector.load %arg3[%c0_1, %c0_2] : memref<64x64xbf16, #tpu.memory_space<vmem>>, vector<64x64xbf16>
    %cst = arith.constant dense<0.000000e+00> : vector<8x64xf32>
    %3 = tpu.matmul %1, %2, %cst {dimension_numbers = #tpu.dot_dimension_numbers<[1], [0], [0], [1], [0, 0, 1, 1], [], []>} : vector<8x64xbf16>, vector<64x64xbf16>, vector<8x64xf32> -> vector<8x64xf32>
    %c0_3 = arith.constant 0 : index
    %c0_4 = arith.constant 0 : index
    %4 = vector.load %arg2[%c0_3, %c0_4] : memref<8x128xf32, #tpu.memory_space<vmem>>, vector<8x128xf32>
    %5 = arith.truncf %4 : vector<8x128xf32> to vector<8x128xbf16>
    %c0_5 = arith.constant 0 : index
    %c0_6 = arith.constant 0 : index
    %6 = vector.load %arg4[%c0_5, %c0_6] : memref<128x128xbf16, #tpu.memory_space<vmem>>, vector<128x128xbf16>
    %cst_7 = arith.constant dense<0.000000e+00> : vector<8x128xf32>
    %7 = tpu.matmul %5, %6, %cst_7 {dimension_numbers = #tpu.dot_dimension_numbers<[1], [0], [0], [1], [0, 0, 1, 1], [], []>} : vector<8x128xbf16>, vector<128x128xbf16>, vector<8x128xf32> -> vector<8x128xf32>
    %c0_8 = arith.constant 0 : index
    %c0_9 = arith.constant 0 : index
    %8 = vector.load %arg5[%c0_8, %c0_9] : memref<1x128xf32, #tpu.memory_space<vmem>>, vector<1x128xf32>
    %9 = vector.broadcast %8 : vector<1x128xf32> to vector<8x128xf32>
    %10 = arith.addf %7, %9 : vector<8x128xf32>
    %11 = vector.extract_strided_slice %10 {offsets = [0, 0], sizes = [8, 64], strides = [1, 1]} : vector<8x128xf32> to vector<8x64xf32>
    %12 = vector.extract_strided_slice %10 {offsets = [0, 64], sizes = [8, 64], strides = [1, 1]} : vector<8x128xf32> to vector<8x64xf32>
    %c0_10 = arith.constant 0 : index
    %c0_11 = arith.constant 0 : index
    %13 = vector.load %arg6[%c0_10, %c0_11] : memref<64x64xbf16, #tpu.memory_space<vmem>>, vector<64x64xbf16>
    %14 = arith.truncf %11 : vector<8x64xf32> to vector<8x64xbf16>
    %15 = tpu.concatenate %14, %14, %14, %14, %14, %14, %14, %14 in 0 : vector<8x64xbf16>, vector<8x64xbf16>, vector<8x64xbf16>, vector<8x64xbf16>, vector<8x64xbf16>, vector<8x64xbf16>, vector<8x64xbf16>, vector<8x64xbf16> -> vector<64x64xbf16>
    %16 = arith.mulf %15, %13 : vector<64x64xbf16>
    %17 = arith.truncf %12 : vector<8x64xf32> to vector<8x64xbf16>
    %18 = tpu.concatenate %17, %17, %17, %17, %17, %17, %17, %17 in 0 : vector<8x64xbf16>, vector<8x64xbf16>, vector<8x64xbf16>, vector<8x64xbf16>, vector<8x64xbf16>, vector<8x64xbf16>, vector<8x64xbf16>, vector<8x64xbf16> -> vector<64x64xbf16>
    %19 = arith.mulf %18, %13 : vector<64x64xbf16>
    %20 = arith.truncf %3 : vector<8x64xf32> to vector<8x64xbf16>
    %cst_12 = arith.constant dense<0.000000e+00> : vector<8x64xf32>
    %21 = tpu.matmul %20, %16, %cst_12 {dimension_numbers = #tpu.dot_dimension_numbers<[1], [1], [0], [0], [0, 0, 1, 0], [], []>} : vector<8x64xbf16>, vector<64x64xbf16>, vector<8x64xf32> -> vector<8x64xf32>
    %cst_13 = arith.constant dense<0xFF800000> : vector<8xf32>
    %22 = vector.multi_reduction <maximumf>, %21, %cst_13 [1] : vector<8x64xf32> to vector<8xf32>
    %23 = vector.shape_cast %22 : vector<8xf32> to vector<8x1xf32>
    %24 = vector.broadcast %23 : vector<8x1xf32> to vector<8x64xf32>
    %25 = arith.subf %21, %24 : vector<8x64xf32>
    %26 = math.exp %25 : vector<8x64xf32>
    %27 = arith.truncf %26 : vector<8x64xf32> to vector<8x64xbf16>
    %cst_14 = arith.constant dense<0.000000e+00> : vector<8x64xf32>
    %28 = tpu.matmul %27, %19, %cst_14 {dimension_numbers = #tpu.dot_dimension_numbers<[1], [0], [0], [1], [0, 0, 1, 1], [], []>} : vector<8x64xbf16>, vector<64x64xbf16>, vector<8x64xf32> -> vector<8x64xf32>
    %cst_15 = arith.constant dense<0.000000e+00> : vector<8x64xf32>
    %29 = tpu.matmul %27, %13, %cst_15 {dimension_numbers = #tpu.dot_dimension_numbers<[1], [0], [0], [1], [0, 0, 1, 1], [], []>} : vector<8x64xbf16>, vector<64x64xbf16>, vector<8x64xf32> -> vector<8x64xf32>
    %cst_16 = arith.constant 1.000000e-30 : f32
    %30 = vector.broadcast %cst_16 : f32 to vector<8x64xf32>
    %31 = arith.maximumf %29, %30 : vector<8x64xf32>
    %32 = arith.divf %28, %31 : vector<8x64xf32>
    %c0_17 = arith.constant 0 : index
    %c0_18 = arith.constant 0 : index
    %33 = vector.load %arg7[%c0_17, %c0_18] : memref<8x64xf32, #tpu.memory_space<vmem>>, vector<8x64xf32>
    tpu.vector_store %arg7[%c0_17, %c0_18], %32 {strides = array<i32>} : memref<8x64xf32, #tpu.memory_space<vmem>>, vector<8x64xf32>,
    return
  }
  func.func @transform_0(%arg0: i32) -> (i32, i32) {
    %c0_i32 = arith.constant 0 : i32
    %c0_i32_0 = arith.constant 0 : i32
    return %arg0, %c0_i32 : i32, i32
  }
  func.func @transform_1(%arg0: i32) -> (i32, i32) {
    %c0_i32 = arith.constant 0 : i32
    %c0_i32_0 = arith.constant 0 : i32
    return %arg0, %c0_i32 : i32, i32
  }
  func.func @transform_2(%arg0: i32) -> (i32, i32) {
    %c0_i32 = arith.constant 0 : i32
    %c0_i32_0 = arith.constant 0 : i32
    %c0_i32_1 = arith.constant 0 : i32
    return %c0_i32, %c0_i32_0 : i32, i32
  }
  func.func @transform_3(%arg0: i32) -> (i32, i32) {
    %c0_i32 = arith.constant 0 : i32
    %c0_i32_0 = arith.constant 0 : i32
    %c0_i32_1 = arith.constant 0 : i32
    return %c0_i32, %c0_i32_0 : i32, i32
  }
  func.func @transform_4(%arg0: i32) -> (i32, i32) {
    %c0_i32 = arith.constant 0 : i32
    %c0_i32_0 = arith.constant 0 : i32
    %c0_i32_1 = arith.constant 0 : i32
    return %c0_i32, %c0_i32_0 : i32, i32
  }
  func.func @transform_5(%arg0: i32) -> (i32, i32) {
    %c0_i32 = arith.constant 0 : i32
    %c0_i32_0 = arith.constant 0 : i32
    %c0_i32_1 = arith.constant 0 : i32
    return %c0_i32, %c0_i32_0 : i32, i32
  }
  func.func @transform_6(%arg0: i32) -> (i32, i32) {
    %c0_i32 = arith.constant 0 : i32
    %c0_i32_0 = arith.constant 0 : i32
    return %arg0, %c0_i32 : i32, i32
  }
}

</mosaic_0001>

<bundles_post_ra>
// kernel: tpu_custom_call.1
= control target key start
LH: loop header
LB: loop body
LE: loop exit
PB: predicated region body
PF: predicated region fallthrough
CT: control target
= control target key end

     0   :  { %s1797_s0 = inlined_call_operand.hbm [shape: f32[16,64], index: 0, kind: input, shape index: {}]   ;;  %s1798_s1 = inlined_call_operand.hbm [shape: f32[16,128], index: 1, kind: input, shape index: {}]   ;;  %s1799_s2 = inlined_call_operand.hbm [shape: bf16[64,64], index: 2, kind: input, shape index: {}]   ;;  %s1800_s3 = inlined_call_operand.hbm [shape: bf16[128,128], index: 3, kind: input, shape index: {}]   ;;  %s1801_s4 = inlined_call_operand.vmem [shape: f32[1,128], index: 4, kind: input, shape index: {}]   ;;  %s1802_s5 = inlined_call_operand.hbm [shape: bf16[64,64], index: 5, kind: input, shape index: {}]   ;;  %s1803_s6 = inlined_call_operand.hbm [shape: f32[16,64], index: 6, kind: output, shape index: {}]  }
   0x1   :  { %1808 = sst [smem:[#allocation17_spill]] %s1799_s2 }
   0x2   :  { %1809 = sst [smem:[#allocation18_spill]] %s1800_s3 }
   0x3   :  { %1810 = sst [smem:[#allocation19_spill]] %s1802_s5 }
   0x4   :  { %11 = vsyncpa [#allocation3], 0 }
   0x5   :  { %13 = vsyncpa [#allocation3 + $0x1], 0 }
   0x6   :  { %14 = vsyncpa [#allocation6], 0 }
   0x7   :  { %16 = vsyncpa [#allocation6 + $0x1], 0 }
   0x8   :  { %17 = vsyncpa [#allocation9], 0 }
   0x9   :  { %18 = vsyncpa [#allocation4], 0 }
   0xa   :  { %20 = vsyncpa [#allocation4 + $0x1], 0  ;;  %s1416_s21 = smov 0   ;;  %s1418_s22 = smov 0  }
   0xb   :  { %s1420_s23 = smov 0   ;;  %s1422_s24 = smov 0  }
   0xc LB: > { %s1437_s25 = sadd.s32 4294967295, %s1368_s24   ;;  %s900_s26 = sadd.s32 4294967294, %s1368_s24   ;;  %s1368_s24 = sphi %s1422_s24, %s1834_s24   ;;  %s1364_s23 = sphi %s1420_s23, %s1833_s23   ;;  %s1360_s22 = sphi %s1418_s22, %s1832_s22   ;;  %s1356_s21 = sphi %s1416_s21, %s1831_s21  }
   0xd   : > { %p46_p0 = scmp.ne.s32.totalorder %s1360_s22, %s1356_s21  ;;  %p1804_p1 = scmp.eq.s32.totalorder %s1437_s25, 0 }
   0xe   : > { %p186_p3 = scmp.eq.s32.totalorder %s900_s26, 1  ;;  %p901_p5 = scmp.ge.s32.totalorder %s1368_s24, 1 }
   0xf   : > { %p1446_p4 = por %p1804_p1, %p46_p0  ;;  %p193_p7 = scmp.lt.s32.totalorder %s1368_s24, 3 }
  0x10   : > { %p1451_p6 = por %p186_p3, %p46_p0  ;;  %s1370_s30 = smov [#allocation7]  }
  0x11   : > { %s1811_s27 = scalar_select %p1446_p4, 1, 0 }
  0x12   : > { %s1812_s28 = scalar_select %p1451_p6, 1, 0 }
  0x13   : > { %p1456_p8 = pnand %p901_p5, %p193_p7  ;;  %s205_s7 = sshll.u32 %s1370_s30, 4  ;;  %s1460_s7 = int_to_ptr.vmem [resolvable:$true] %s205_s7 }
  0x14   : > { %s1371_s9 = smov [#allocation8]   ;;  %s1372_s11 = smov [#allocation10]  }
  0x15   : > { %s1813_s29 = scalar_select %p1456_p8, 1, 0 }
  0x16   : > { %p1057_p9 = pneg %p1456_p8  ;;  %s218_s10 = sshll.u32 %s1371_s9, 4  ;;  %s1471_s10 = int_to_ptr.vmem [resolvable:$true] %s218_s10 }
  0x17   : > { %s1473_s12 = sshll.u32 %s1372_s11, 4  ;;  %s1815_s2 = sld [smem:[#allocation17_spill]]  ;;  %s235_s12 = int_to_ptr.vmem [resolvable:$true] %s1473_s12 }
  0x18   : > { %p1467_p11 = pnand %p1057_p9, %p1804_p1 }
  0x1a   : > { %p1483_p13 = pneg %p1467_p11 }
  0x1d   : > { %s1146_s15 = scalar_lea.hbm %s1815_s2, 512 }
  0x1e   : > { %p1147_p12 = scmp.ne.s32.totalorder %s1815_s2, %s1146_s15  ;;  %p1153_p5 = scmp.lt.u32.totalorder %s1146_s15, %s1815_s2 }
  0x20   : > { %p1149_p0 = pnand %p1483_p13, %p1147_p12 }
  0x22   : > { %p1150_p3 = pneg %p1149_p0 }
  0x24   : > { %p1155_p7 = pnand %p1153_p5, %p1150_p3 }
  0x26   : > { %1158 = shalt.err (!%p1155_p7)
}
  0x27   : > { %s1159_s26 = scalar_lea.vmem %s1460_s7, 512  ;;  %p1167_p2 = scmp.lt.s32.totalorder %s1460_s7, %s1460_s7 }
  0x28   : > { %p1160_p9 = scmp.ne.s32.totalorder %s1460_s7, %s1159_s26  ;;  %p1168_p6 = scmp.lt.s32.totalorder %s1159_s26, %s1159_s26 }
  0x2a   : > { %p1162_p10 = pnand %p1160_p9, %p1483_p13  ;;  %p1169_p12 = por %p1168_p6, %p1167_p2 }
  0x2c   : > { %p1163_p1 = pneg %p1162_p10 }
  0x2e   : > { %p1170_p0 = pnand %p1169_p12, %p1163_p1 }
  0x30   : > { %1173 = shalt.err (!%p1170_p0)
}
  0x31   : > { %s1373_s30 = smov 64   ;;  %s1374_s9 = smov 4  }
  0x32   : > { %1060 = dma.hbm_to_vmem [thread:$0]  (!%p1467_p11), %s1815_s2, 512, %s1460_s7, [#allocation6], %s1373_s30, %s1373_s30, %s1374_s9  }
  0x33   : > { %s1817_s3 = sld [smem:[#allocation18_spill]] }
  0x39   : > { %s1174_s16 = scalar_lea.hbm %s1817_s3, 1024 }
  0x3a   : > { %p1175_p1 = scmp.ne.s32.totalorder %s1817_s3, %s1174_s16  ;;  %p1181_p10 = scmp.lt.u32.totalorder %s1174_s16, %s1817_s3 }
  0x3c   : > { %p1177_p2 = pnand %p1175_p1, %p1483_p13 }
  0x3e   : > { %p1178_p6 = pneg %p1177_p2 }
  0x40   : > { %p1183_p3 = pnand %p1181_p10, %p1178_p6 }
  0x42   : > { %1186 = shalt.err (!%p1183_p3)
}
  0x43   : > { %s1187_s7 = scalar_lea.vmem %s1471_s10, 1024  ;;  %p1195_p12 = scmp.lt.s32.totalorder %s1471_s10, %s1471_s10 }
  0x44   : > { %p1188_p5 = scmp.ne.s32.totalorder %s1471_s10, %s1187_s7  ;;  %p1196_p0 = scmp.lt.s32.totalorder %s1187_s7, %s1187_s7 }
  0x46   : > { %p1190_p7 = pnand %p1188_p5, %p1483_p13  ;;  %p1197_p1 = por %p1196_p0, %p1195_p12 }
  0x48   : > { %p1191_p9 = pneg %p1190_p7 }
  0x4a   : > { %p1198_p2 = pnand %p1197_p1, %p1191_p9 }
  0x4c   : > { %1201 = shalt.err (!%p1198_p2)
}
  0x4d   : > { %1063 = dma.hbm_to_vmem [thread:$0]  (!%p1467_p11), %s1817_s3, 1024, %s1471_s10, [#allocation9], %s1373_s30, %s1373_s30, %s1374_s9  }
  0x4e   : > { %s1818_s5 = sld [smem:[#allocation19_spill]] }
  0x54   : > { %s1202_s16 = scalar_lea.hbm %s1818_s5, 512 }
  0x55   : > { %p1203_p6 = scmp.ne.s32.totalorder %s1818_s5, %s1202_s16  ;;  %p1209_p5 = scmp.lt.u32.totalorder %s1202_s16, %s1818_s5 }
  0x57   : > { %p1205_p10 = pnand %p1203_p6, %p1483_p13 }
  0x59   : > { %p1206_p3 = pneg %p1205_p10 }
  0x5b   : > { %p1211_p7 = pnand %p1209_p5, %p1206_p3 }
  0x5d   : > { %1214 = shalt.err (!%p1211_p7)
}
  0x5e   : > { %s1215_s7 = scalar_lea.vmem %s235_s12, 512  ;;  %p1223_p1 = scmp.lt.s32.totalorder %s235_s12, %s235_s12 }
  0x5f   : > { %p1216_p9 = scmp.ne.s32.totalorder %s235_s12, %s1215_s7  ;;  %p1224_p2 = scmp.lt.s32.totalorder %s1215_s7, %s1215_s7 }
  0x61   : > { %p1218_p12 = pnand %p1216_p9, %p1483_p13  ;;  %p1225_p4 = por %p1224_p2, %p1223_p1 }
  0x63   : > { %p1219_p0 = pneg %p1218_p12 }
  0x65   : > { %p1226_p8 = pnand %p1225_p4, %p1219_p0 }
  0x67   : > { %1229 = shalt.err (!%p1226_p8)
}
  0x68   : > { %1066 = dma.hbm_to_vmem [thread:$0]  (!%p1467_p11), %s1818_s5, 512, %s235_s12, [#allocation9], %s1373_s30, %s1373_s30, %s1374_s9  }
  0x69   : > { %s1556_s18 = sadd.s32 1, %s1368_s24   ;;  %s33_s13 = sadd.s32 1, %s1364_s23 }
  0x6a   : > { %s30_s8 = ssub.s32 %s1368_s24, %s1556_s18  ;;  %p40_p8 = scmp.ne.s32.totalorder %s1364_s23, %s1360_s22 }
  0x6b   : > { %p31_p4 = scmp.eq.s32.totalorder %s30_s8, 0  ;;  %p41_p13 = scmp.eq.s32.totalorder %s1368_s24, 0 }
  0x6c   : > { %p1081_p6 = scmp.lt.s32.totalorder %s1368_s24, 2  ;;  %p1819_p3 = scmp.eq.s32.totalorder %s1437_s25, 1 }
  0x6d   : > { %s1566_s14 = scalar_select %p31_p4, %s1364_s23, %s33_s13  }
  0x6e   : > { %p42_p10 = por %p41_p13, %p40_p8  ;;  %p1570_p5 = por %p1819_p3, %p40_p8 }
  0x6f   : > { %s248_s16 = sand.u32 1, %s1364_s23   ;;  %s907_s17 = sshll.u32 %s1368_s24, 7 }
  0x70   : > { %s1820_s15 = scalar_select %p1570_p5, 1, 0 }
  0x71   : > { %s1576_s12 = sshll.u32 %s248_s16, 3  ;;  %s1581_s19 = scalar_lea.hbm %s1797_s0, %s907_s17 }
  0x72   : > { %s252_s20 = scalar_lea.vmem [#allocation2], %s1576_s12  ;;  %p1584_p11 = pnand %p1081_p6, %p42_p10 }
  0x73   : > { %s259_s26 = sshll.u32 %s252_s20, 4  ;;  %s1593_s8 = scalar_lea.hbm %s1798_s1, %s907_s17  ;;  %s1588_s26 = int_to_ptr.vmem [resolvable:$true] %s259_s26 }
  0x74   : > { %s249_s13 = scalar_lea.sflag [#allocation3], %s248_s16  ;;  %s1230_s30 = scalar_lea.hbm %s1581_s19, 128 }
  0x75   : > { %p1231_p7 = scmp.ne.s32.totalorder %s1581_s19, %s1230_s30  ;;  %p1232_p9 = pneg %p1584_p11 }
  0x76   : > { %s1235_s2 = scalar_lea.hbm %s1797_s0, 256  ;;  %p1236_p1 = scmp.lt.u32.totalorder %s1581_s19, %s1797_s0 }
  0x77   : > { %p1233_p12 = pnand %p1232_p9, %p1231_p7  ;;  %p1237_p2 = scmp.lt.u32.totalorder %s1235_s2, %s1230_s30 }
  0x78   : > { %p1239_p8 = scmp.lt.u32.totalorder %s1230_s30, %s1581_s19 }
  0x79   : > { %p1234_p0 = pneg %p1233_p12  ;;  %p1238_p4 = por %p1237_p2, %p1236_p1 }
  0x7b   : > { %p1240_p13 = por %p1239_p8, %p1238_p4 }
  0x7d   : > { %p1241_p6 = pnand %p1240_p13, %p1234_p0 }
  0x7f   : > { %1244 = shalt.err (!%p1241_p6)
}
  0x80   : > { %s1245_s16 = scalar_lea.vmem %s1588_s26, 128  ;;  %s1375_s17 = smov [#allocation2]  }
  0x81   : > { %p1246_p10 = scmp.ne.s32.totalorder %s1588_s26, %s1245_s16  ;;  %s1250_s10 = sshll.u32 %s1375_s17, 4  ;;  %s1251_s10 = int_to_ptr.vmem [resolvable:$false] %s1250_s10 }
  0x82   : > { %s1252_s3 = scalar_lea.vmem %s1251_s10, 256  ;;  %p1253_p12 = scmp.lt.s32.totalorder %s1588_s26, %s1251_s10 }
  0x83   : > { %p1248_p3 = pnand %p1246_p10, %p1232_p9  ;;  %p1254_p1 = scmp.lt.s32.totalorder %s1252_s3, %s1245_s16 }
  0x85   : > { %p1249_p7 = pneg %p1248_p3  ;;  %p1255_p2 = por %p1254_p1, %p1253_p12 }
  0x87   : > { %p1256_p4 = pnand %p1255_p2, %p1249_p7 }
  0x89   : > { %1259 = shalt.err (!%p1256_p4)
}
  0x8a   : > { %1070 = dma.hbm_to_vmem [thread:$0]  (!%p1584_p11), %s1581_s19, 128, %s1588_s26, %s249_s13  }
  0x8b   : > { %s266_s2 = sand.u32 1, %s1368_s24   ;;  %s270_s5 = scalar_lea.vmem [#allocation5], %s1576_s12 }
  0x8c   : > { %s277_s11 = sshll.u32 %s270_s5, 4  ;;  %s267_s30 = scalar_lea.sflag [#allocation6], %s266_s2  ;;  %s278_s11 = int_to_ptr.vmem [resolvable:$true] %s277_s11 }
  0x8d   : > { %s1260_s9 = scalar_lea.hbm %s1593_s8, 128  ;;  %s1265_s17 = scalar_lea.hbm %s1798_s1, 256 }
  0x8e   : > { %p1261_p0 = scmp.ne.s32.totalorder %s1593_s8, %s1260_s9  ;;  %p1266_p6 = scmp.lt.u32.totalorder %s1593_s8, %s1798_s1 }
  0x8f   : > { %p1267_p10 = scmp.lt.u32.totalorder %s1265_s17, %s1260_s9  ;;  %p1269_p7 = scmp.lt.u32.totalorder %s1260_s9, %s1593_s8 }
  0x90   : > { %p1263_p8 = pnand %p1261_p0, %p1232_p9 }
  0x91   : > { %p1268_p3 = por %p1267_p10, %p1266_p6 }
  0x92   : > { %p1264_p13 = pneg %p1263_p8 }
  0x93   : > { %p1270_p12 = por %p1269_p7, %p1268_p3 }
  0x95   : > { %p1271_p1 = pnand %p1270_p12, %p1264_p13 }
  0x97   : > { %1274 = shalt.err (!%p1271_p1)
}
  0x98   : > { %s1275_s12 = scalar_lea.vmem %s278_s11, 128  ;;  %s1376_s19 = smov [#allocation5]  }
  0x99   : > { %p1276_p2 = scmp.ne.s32.totalorder %s278_s11, %s1275_s12  ;;  %s1280_s26 = sshll.u32 %s1376_s19, 4  ;;  %s1281_s26 = int_to_ptr.vmem [resolvable:$false] %s1280_s26 }
  0x9a   : > { %s1282_s13 = scalar_lea.vmem %s1281_s26, 256  ;;  %p1283_p8 = scmp.lt.s32.totalorder %s278_s11, %s1281_s26 }
  0x9b   : > { %p1278_p4 = pnand %p1276_p2, %p1232_p9  ;;  %p1284_p5 = scmp.lt.s32.totalorder %s1282_s13, %s1275_s12 }
  0x9d   : > { %p1279_p0 = pneg %p1278_p4  ;;  %p1285_p6 = por %p1284_p5, %p1283_p8 }
  0x9f   : > { %p1286_p10 = pnand %p1285_p6, %p1279_p0 }
  0xa1   : > { %1289 = shalt.err (!%p1286_p10)
}
  0xa2   : > { %1073 = dma.hbm_to_vmem [thread:$0]  (!%p1584_p11), %s1593_s8, 128, %s278_s11, %s267_s30  }
  0xa3   : > { %p1822_p13 = scmp.ne.s32.totalorder %s1813_s29, 0 }
  0xa4   : > { %s1644_s2 = sand.u32 (!%p1822_p13), 1, %s1360_s22   ;;  %p1823_p5 = scmp.ne.s32.totalorder (!%p1822_p13), %s1811_s27, 0 }
  0xa5   : > { %286 = sbr.rel (%p1822_p13) target bundleno = 1083 (0x43b), region = 44  ;;  %s1647_s5 = sshll.u32 (!%p1822_p13), %s1644_s2, 3 }
  0xa6   : > { %s289_s9 = scalar_lea.sflag (!%p1822_p13), [#allocation3], %s1644_s2  ;;  %s292_s20 = scalar_lea.vmem (!%p1822_p13), [#allocation2], %s1647_s5 }
  0xac   : > { %1335 = dma.done.wait (%p1823_p5), %s289_s9, 128  }
  0xad   : > { %1337 = vsyncadd (%p1823_p5), %s289_s9, 4294967168  ;;  %s297_s29 = sand.u32 1, %s1437_s25   ;;  %s301_s8 = scalar_lea.vmem [#allocation5], %s1647_s5 }
  0xae   : > { %s298_s7 = scalar_lea.sflag [#allocation6], %s297_s29 }
  0xaf   : > { %1339 = dma.done.wait (%p1823_p5), %s298_s7, 128  }
  0xb0   : > { %1341 = vsyncadd (%p1823_p5), %s298_s7, 4294967168  ;;  %p1824_p11 = scmp.eq.s32.totalorder %s1437_s25, 0 }
  0xb2   : > { %1343 = dma.done.wait (%p1824_p11), [#allocation6], 512   ;;  %p1825_p9 = pmov %p1824_p11 }
  0xb4   : > { %1345 = vsyncadd (%p1825_p9), [#allocation6], 4294966784  ;;  %p1826_p3 = pmov %p1825_p9 }
  0xb6   : > { %1347 = dma.done.wait (%p1826_p3), [#allocation9], 1536   ;;  %p1827_p7 = pmov %p1826_p3 }
  0xb7   : > { %v1377_v0 = vmov 0.0   ;;  %vm1378_vm0 = vmmov 0   ;;  %v1126_v1 = vld [vmem:[#allocation8] sm:$0xff]   ;;  %v1127_v2 = vld [vmem:[#allocation8 + $0x8] sm:$0xff]   ;;  %v1128_v3 = vld [vmem:[#allocation8 + $0x10] sm:$0xff]   ;;  %s1379_s27 = smov 64  }
  0xb8   : > { %1349 = vsyncadd (%p1827_p7), [#allocation9], 4294965760  ;;  %983 = vmatprep.subr.bf16.mxu1 %v1377_v0  ;;  %999 = vmatprep.mubr.msk.bf16.mxu1 %vm1378_vm0, %v1377_v0  ;;  %v1134_v4 = vld [vmem:[#allocation7] sm:$0xff]   ;;  %v1129_v5 = vld [vmem:[#allocation8 + $0x18] sm:$0xff]   ;;  %vm382_vm1 = vcmask 523264   ;;  %vm550_vm2 = vcmask 1043456  }
  0xb9   : > { %971 = vmatprep.subr.bf16.mxu0 %v1377_v0  ;;  %979 = vmatprep.mubr.msk.bf16.mxu0 %vm1378_vm0, %v1377_v0  ;;  %v1135_v6 = vld [vmem:[#allocation7 + $0x8] sm:$0xff]   ;;  %v1130_v7 = vld [vmem:[#allocation8 + $0x20] sm:$0xff]   ;;  %v1679_v8 = vld [vmem:[#allocation10 + $0x10] sm:$0xff]   ;;  %s939_s16 = sshll.u32 %s1437_s25, 7  ;;  %s346_s17 = scalar_lea.vmem [#allocation11], %s1647_s5 }
  0xba   : > { %984 = vmatpush3.bf16.msra.mxu1 %v1126_v1  ;;  %972 = vmatpush3.bf16.msra.mxu0 %v1134_v4  ;;  %v1681_v9 = vld [vmem:[#allocation10] sm:$0xff]   ;;  %v1136_v10 = vld [vmem:[#allocation7 + $0x10] sm:$0xff]   ;;  %v1687_v11 = vld [vmem:[#allocation10 + $0x18] sm:$0xff]   ;;  %s779_s10 = sshll.u32 %s346_s17, 4  ;;  %s1752_s19 = scalar_lea.hbm %s1803_s6, %s939_s16  ;;  %s1754_s10 = int_to_ptr.vmem [resolvable:$true] %s779_s10 }
  0xbb   : > { %985 = vmatprep.subr.bf16.mxu1 %v1377_v0  ;;  %973 = vmatprep.subr.bf16.mxu0 %v1377_v0  ;;  %v1691_v12 = vld [vmem:[#allocation10 + $0x8] sm:$0xff]   ;;  %v1137_v14 = vld [vmem:[#allocation7 + $0x18] sm:$0xff]   ;;  %v1132_v16 = vld [vmem:[#allocation8 + $0x30] sm:$0xff]   ;;  %s766_s26 = scalar_lea.sflag [#allocation4], %s1644_s2  ;;  %s1290_s13 = scalar_lea.vmem %s1754_s10, 128 }
  0xbc   : > { %587 = vrot.lane.b32.xlu1 %v1679_v8, %s1379_s27  ;;  %583 = vrot.lane.b32.xlu0 %v1681_v9, %s1379_s27  ;;  %v1131_v13 = vld [vmem:[#allocation8 + $0x28] sm:$0xff]   ;;  %v1133_v18 = vld [vmem:[#allocation8 + $0x38] sm:$0xff]   ;;  %v922_v25 = vld [vmem:[%s1801_s4] ss:$0 sm:$0xff]  ;;  %p1291_p12 = scmp.ne.s32.totalorder %s1754_s10, %s1290_s13  ;;  %p1828_p1 = scmp.ne.s32.totalorder %s1820_s15, 0 }
  0xbd   : > { %v348_v15 = vld [vmem:[%s292_s20] sm:$0xff]  ;;  %v426_v19 = vld [vmem:[%s301_s8] sm:$0xff]  ;;  %s1380_s25 = smov [#allocation11]  }
  0xbe   : > { %986 = vmatpush3.bf16.msra.mxu1 %v1127_v2  ;;  %974 = vmatpush3.bf16.msra.mxu0 %v1135_v6  ;;  %v349_v17 = vpack.c.bf16 %v348_v15, %v348_v15  ;;  %v427_v20 = vpack.c.bf16 %v426_v19, %v426_v19  ;;  %p1292_p2 = pnand %p1291_p12, %p1828_p1  ;;  %s1294_s5 = sshll.u32 %s1380_s25, 4  ;;  %s1295_s5 = int_to_ptr.vmem [resolvable:$false] %s1294_s5 }
  0xbf   : > { %987 = vmatprep.subr.bf16.mxu1 %v1377_v0  ;;  %975 = vmatprep.subr.bf16.mxu0 %v1377_v0  ;;  %s1296_s9 = scalar_lea.vmem %s1295_s5, 256  ;;  %p1297_p0 = scmp.lt.s32.totalorder %s1754_s10, %s1295_s5 }
  0xc0   : > { %589 = vrot.lane.b32.xlu1 %v1687_v11, %s1379_s27  ;;  %585 = vrot.lane.b32.xlu0 %v1691_v12, %s1379_s27  ;;  %p1293_p4 = pneg %p1292_p2  ;;  %p1298_p8 = scmp.lt.s32.totalorder %s1296_s9, %s1290_s13 }
  0xc2   : > { %988 = vmatpush3.bf16.msra.mxu1 %v1128_v3  ;;  %976 = vmatpush3.bf16.msra.mxu0 %v1136_v10  ;;  %p1299_p6 = por %p1298_p8, %p1297_p0 }
  0xc3   : > { %989 = vmatprep.subr.bf16.mxu1 %v1377_v0  ;;  %977 = vmatprep.subr.bf16.mxu0 %v1377_v0 }
  0xc4   : > { %p1300_p10 = pnand %p1299_p6, %p1293_p4 }
  0xc6   : > { %990 = vmatpush3.bf16.msra.mxu1 %v1129_v5  ;;  %978 = vmatpush3.bf16.msra.mxu0 %v1137_v14 }
  0xc7   : > { %991 = vmatprep.subr.bf16.mxu1 %v1377_v0  ;;  %1003 = vmatprep.subr.bf16.mxu0 %v1377_v0 }
  0xc9   : > { %980 = vmatmul.mubr.msk.bf16.vlgmr.msra.gmra.mrb[0].mxu0 %vm382_vm1, %v349_v17 }
  0xca   : > { %992 = vmatpush3.bf16.msra.mxu1 %v1130_v7  ;;  %1011 = vmatprep.mubr.msk.bf16.mxu0 %vm1378_vm0, %v1377_v0 }
  0xcb   : > { %993 = vmatprep.subr.bf16.mxu1 %v1377_v0 }
  0xce   : > { %994 = vmatpush3.bf16.msra.mxu1 %v1131_v13 }
  0xcf   : > { %995 = vmatprep.subr.bf16.mxu1 %v1377_v0 }
  0xd2   : > { %996 = vmatpush3.bf16.msra.mxu1 %v1132_v16 }
  0xd3   : > { %997 = vmatprep.subr.bf16.mxu1 %v1377_v0 }
  0xd6   : > { %998 = vmatpush3.bf16.msra.mxu1 %v1133_v18 }
  0xd7   : > { %1015 = vmatprep.subr.bf16.mxu1 %v1377_v0 }
  0xd9   : > { %1000 = vmatmul.mubr.bf16.vlgmr.msra.gmra.mrb[0].mxu1 %v427_v20 }
  0xda   : > { %1023 = vmatprep.mubr.msk.bf16.mxu1 %vm1378_vm0, %v1377_v0 }
 0x12e   : > { %v584_v31 = vpop.permute.xlu0 %583  ;;  %v588_v38 = vpop.permute.xlu1 %587 }
 0x132   : > { %v586_v36 = vpop.permute.xlu0 %585  ;;  %v590_v43 = vpop.permute.xlu1 %589 }
 0x19c   : > { %v420_v21 = vpop.f32.mrb[0].mxu0 }
 0x19d   : > { %v981_v22 = vpop.f32.mrb[1].mxu0  ;;  %v599_v50 = vpack.c.bf16 %v420_v21, %v420_v21 }
 0x19e   : > { %v423_v23 = vpop.f32.mrb[2].mxu0 }
 0x19f   : > { %v982_v24 = vpop.f32.mrb[3].mxu0 }
 0x1ac   : > { %v533_v26 = vpop.f32.mrb[0].mxu1 }
 0x1ad   : > { %v534_v27 = vadd.f32 %v922_v25, %v533_v26  ;;  %v1001_v28 = vpop.f32.mrb[1].mxu1 }
 0x1ae   : > { %v536_v29 = vpop.f32.mrb[2].mxu1 }
 0x1af   : > { %v547_v30 = vpack.c.bf16 %v534_v27, %v534_v27  ;;  %v1002_v32 = vpop.f32.mrb[3].mxu1 }
 0x1b1   : > { %v549_v33 = vrot.slane %v547_v30, 4 }
 0x1b3   : > { %v553_v34 = vsel %vm550_vm2, %v547_v30, %v549_v33 }
 0x1b4   : > { %v595_v35 = vmul.bf16 %v584_v31, %v553_v34  ;;  %v579_v37 = vmul.bf16 %v1681_v9, %v553_v34  ;;  %v596_v40 = vmul.bf16 %v586_v36, %v553_v34  ;;  %v580_v41 = vmul.bf16 %v1691_v12, %v553_v34 }
 0x1b5   : > { %v597_v42 = vmul.bf16 %v588_v38, %v553_v34  ;;  %v598_v45 = vmul.bf16 %v590_v43, %v553_v34  ;;  %v581_v46 = vmul.bf16 %v1679_v8, %v553_v34  ;;  %v582_v48 = vmul.bf16 %v1687_v11, %v553_v34 }
 0x1b6   : > { %666 = vrot.lane.b32.xlu1 %v595_v35, %s1379_s27  ;;  %v604_v39 = vsel %vm382_vm1, %v579_v37, 0  ;;  %v607_v44 = vsel %vm382_vm1, %v580_v41, 0 }
 0x1b7   : > { %1004 = vmatpush3.bf16.xpose.msra.mxu0 %v604_v39  ;;  %v610_v47 = vsel %vm382_vm1, %v581_v46, 0  ;;  %v613_v49 = vsel %vm382_vm1, %v582_v48, 0 }
 0x1b8   : > { %1005 = vmatprep.subr.bf16.mxu0 %v1377_v0 }
 0x1ba   : > { %668 = vrot.lane.b32.xlu1 %v596_v40, %s1379_s27 }
 0x1be   : > { %670 = vrot.lane.b32.xlu1 %v597_v42, %s1379_s27 }
 0x1bf   : > { %1006 = vmatpush3.bf16.xpose.msra.mxu0 %v607_v44 }
 0x1c0   : > { %1007 = vmatprep.subr.bf16.mxu0 %v1377_v0 }
 0x1c2   : > { %672 = vrot.lane.b32.xlu1 %v598_v45, %s1379_s27 }
 0x1c7   : > { %1008 = vmatpush3.bf16.xpose.msra.mxu0 %v610_v47 }
 0x1c8   : > { %1009 = vmatprep.subr.bf16.mxu0 %v1377_v0 }
 0x1cf   : > { %1010 = vmatpush3.bf16.xpose.msra.mxu0 %v613_v49 }
 0x1d0   : > { %1027 = vmatprep.subr.bf16.mxu0 %v1377_v0 }
 0x1d6   : > { %1012 = vmatmul.mubr.msk.bf16.vlgmr.msra.gmra.mrb[4].mxu0 %vm382_vm1, %v599_v50 }
 0x1d7   : > { %1028 = vmatpush3.bf16.msra.mxu0 %v1681_v9  ;;  %1035 = vmatprep.mubr.msk.bf16.mxu0 %vm1378_vm0, %v1377_v0 }
 0x1d8   : > { %1029 = vmatprep.subr.bf16.mxu0 %v1377_v0 }
 0x1db   : > { %1030 = vmatpush3.bf16.msra.mxu0 %v1691_v12 }
 0x1dc   : > { %1031 = vmatprep.subr.bf16.mxu0 %v1377_v0 }
 0x1df   : > { %1032 = vmatpush3.bf16.msra.mxu0 %v1679_v8 }
 0x1e0   : > { %1033 = vmatprep.subr.bf16.mxu0 %v1377_v0 }
 0x1e3   : > { %1034 = vmatpush3.bf16.msra.mxu0 %v1687_v11 }
 0x228   : > { %v667_v51 = vpop.permute.xlu1 %666 }
 0x229   : > { %1016 = vmatpush3.bf16.msra.mxu1 %v667_v51 }
 0x22a   : > { %1017 = vmatprep.subr.bf16.mxu1 %v1377_v0 }
 0x22c   : > { %v669_v52 = vpop.permute.xlu1 %668 }
 0x22d   : > { %1018 = vmatpush3.bf16.msra.mxu1 %v669_v52 }
 0x22e   : > { %1019 = vmatprep.subr.bf16.mxu1 %v1377_v0 }
 0x230   : > { %v671_v53 = vpop.permute.xlu1 %670 }
 0x231   : > { %1020 = vmatpush3.bf16.msra.mxu1 %v671_v53 }
 0x232   : > { %1021 = vmatprep.subr.bf16.mxu1 %v1377_v0 }
 0x234   : > { %v673_v54 = vpop.permute.xlu1 %672 }
 0x235   : > { %1022 = vmatpush3.bf16.msra.mxu1 %v673_v54 }
 0x2a9   : > { %v649_v55 = vpop.f32.mrb[4].mxu0 }
 0x2aa   : > { %v1013_v56 = vpop.f32.mrb[5].mxu0  ;;  %v655_v57 = vsel %vm382_vm1, %v649_v55, -inf }
 0x2ab   : > { %656 = vmax.xlane.f32.xlu0 %v655_v57  ;;  %v652_v58 = vpop.f32.mrb[6].mxu0 }
 0x2ac   : > { %v1014_v59 = vpop.f32.mrb[7].mxu0 }
 0x338   : > { %v657_v60 = vpop.xlane.xlu0 %656 }
 0x339   : > { %v658_v61 = vsub.f32 %v649_v55, %v657_v60 }
 0x33b   : > { %v659_v62 = vmul.f32 1.442695, %v658_v61 }
 0x33d   : > { %1142 = vpow2.f32 %v659_v62 }
 0x347   : > { %v1143_v63 = vpop.eup %1142 }
 0x348   : > { %v661_v1 = vpack.c.bf16 %v1143_v63, %v1143_v63 }
 0x34a   : > { %1024 = vmatmul.mubr.msk.bf16.vlgmr.msra.gmra.mrb[4].mxu1 %vm382_vm1, %v661_v1  ;;  %1036 = vmatmul.mubr.msk.bf16.vlgmr.msra.gmra.mrb[8].mxu0 %vm382_vm1, %v661_v1 }
 0x41d   : > { %v715_v0 = vpop.f32.mrb[4].mxu1  ;;  %v755_v2 = vpop.f32.mrb[8].mxu0 }
 0x41e   : > { %v761_v3 = vmax.f32 %v755_v2, 1e-30  ;;  %v1025_v4 = vpop.f32.mrb[5].mxu1  ;;  %v1037_v5 = vpop.f32.mrb[9].mxu0 }
 0x41f   : > { %v718_v6 = vpop.f32.mrb[6].mxu1  ;;  %v758_v7 = vpop.f32.mrb[10].mxu0 }
 0x420   : > { %1144 = vrcp.f32 %v761_v3  ;;  %v1026_v8 = vpop.f32.mrb[7].mxu1  ;;  %v1038_v9 = vpop.f32.mrb[11].mxu0 }
 0x42a   : > { %v1145_v10 = vpop.eup %1144 }
 0x42b   : > { %v763_v11 = vmul.f32 %v1145_v10, %v715_v0 }
 0x42d   : > { %764 = vst.msk [vmem:[%s346_s17] sm:$0xff] %vm382_vm1, %v763_v11 }
 0x42e   : > { %1303 = shalt.err (!%p1300_p10)
}
 0x42f   : > { %s1304_s2 = scalar_lea.hbm %s1752_s19, 128  ;;  %s1308_s7 = scalar_lea.hbm %s1803_s6, 256 }
 0x430   : > { %p1305_p13 = scmp.ne.s32.totalorder %s1752_s19, %s1304_s2  ;;  %p1309_p9 = scmp.lt.u32.totalorder %s1752_s19, %s1803_s6 }
 0x431   : > { %p1310_p3 = scmp.lt.u32.totalorder %s1308_s7, %s1304_s2  ;;  %p1312_p12 = scmp.lt.u32.totalorder %s1304_s2, %s1752_s19 }
 0x432   : > { %p1306_p5 = pnand %p1305_p13, %p1828_p1 }
 0x433   : > { %p1311_p7 = por %p1310_p3, %p1309_p9 }
 0x434   : > { %p1307_p11 = pneg %p1306_p5 }
 0x435   : > { %p1313_p2 = por %p1312_p12, %p1311_p7 }
 0x437   : > { %p1314_p4 = pnand %p1313_p2, %p1307_p11 }
 0x439   : > { %1317 = shalt.err (!%p1314_p4)
}
 0x43a   : > { %1055 = dma.vmem_to_hbm [thread:$0]  (%p1828_p1), %s1754_s10, 128, %s1752_s19, %s766_s26  }
 0x43b PF: > { %s791_s11 = sand.u32 1, %s1356_s21   ;;  %p1829_p0 = scmp.ne.s32.totalorder %s1812_s28, 0 }
 0x43c   : > { %p1830_p8 = scmp.ge.s32.totalorder %s1368_s24, 2  ;;  %s792_s30 = scalar_lea.sflag [#allocation4], %s791_s11 }
 0x43e   : > { %p1075_p6 = pnand %p1830_p8, %p1829_p0 }
 0x440   : > { %1351 = dma.done.wait (!%p1075_p6), %s792_s30, 128  }
 0x441   : > { %1353 = vsyncadd (!%p1075_p6), %s792_s30, 4294967168  ;;  %p23_p10 = scmp.ge.s32.totalorder %s1556_s18, 4   ;;  %s1831_s21 = smov %s1360_s22 }
 0x442   : > { %s1832_s22 = smov %s1364_s23  ;;  %s1833_s23 = smov %s1566_s14 }
 0x443   : > { %s1834_s24 = smov %s1556_s18  ;;  %25 = sbr.rel (!%p23_p10) target bundleno = 12 (0xc), region = 114 }
 0x44a   :  { %797 = vsyncpa [#allocation3], 1 }
 0x44b   :  { %799 = vsyncpa [#allocation3 + $0x1], 1 }
 0x44c   :  { %800 = vsyncpa [#allocation6], 1 }
 0x44d   :  { %802 = vsyncpa [#allocation6 + $0x1], 1 }
 0x44e   :  { %803 = vsyncpa [#allocation9], 1 }
 0x44f   :  { %804 = vsyncpa [#allocation4], 1 }
 0x450   :  { %806 = vsyncpa [#allocation4 + $0x1], 1 }

</bundles_post_ra>
